<compile_context>
chip_gen: v5e
topology: v5e:2x2
jax: 0.10.0
libtpu: 0.0.40
codegen_flags: <defaults>
</compile_context>

<pallas_src>
import jax
import jax.numpy as jnp
from jax.experimental import pallas as pl
from jax.experimental.pallas import tpu as pltpu

F32 = jnp.float32
BF16 = jnp.bfloat16
LANE = 128      # lane width of a vreg
SUBLANE = 8     # sublane count of a vreg

# > default scoped VMEM on v5e (16 MiB) / v6e / v7x (32 MiB), < physical on all.
VMEM_LIMIT_BYTES = 48 * 1024 * 1024


def _round_up(n, m):
    return ((n + m - 1) // m) * m


def _pad2d(a, rows, cols):
    """Zero-pad a 2-D array up to (rows, cols)."""
    return jnp.pad(a, ((0, rows - a.shape[0]), (0, cols - a.shape[1])))


# ----------------------------------------------------------------------------
# Kernel: fused Bottleneck forward on one batch block.
# ----------------------------------------------------------------------------
def _bottleneck_kernel(x_ref, w1_ref, b1_ref, w2_ref, b2_ref, o_ref):
    # Hoist biases once (JAX does not CSE broadcast_in_dim).
    b1 = b1_ref[...]                       # f32 (1, hid_p)
    b2 = b2_ref[...]                       # f32 (1, out_p)
    # bf16 MXU operands, f32 accumulation (fine on v5e/v6e/v7x MXUs).
    x = x_ref[...].astype(BF16)
    h = jnp.dot(x, w1_ref[...], preferred_element_type=jnp.float32) + b1
    h = jnp.maximum(h, 0.0).astype(BF16)
    y = jnp.dot(h, w2_ref[...], preferred_element_type=jnp.float32) + b2
    o_ref[...] = y.astype(o_ref.dtype)


# ----------------------------------------------------------------------------
# One-time parameter preparation (OUTSIDE the hot path).
# ----------------------------------------------------------------------------
def prepare_bottleneck_params(params):
    """Pad weights/biases to lane-dense slabs and pre-cast weights to bf16.

    Zero padding is mathematically inert: zero W1 columns + zero b1 lanes give
    relu(0)=0 hidden lanes, zero W2 rows contribute nothing, and padded output
    columns are sliced off in the wrapper. The contraction dim of W1 stays at
    the true in_features (block dim == full array dim is legal), matching the
    unpadded x feature axis.
    """
    w1, b1, w2, b2 = params["w1"], params["b1"], params["w2"], params["b2"]
    in_f, hid_f = w1.shape
    out_f = w2.shape[1]
    hid_p = _round_up(hid_f, LANE)
    out_p = _round_up(out_f, LANE)
    return {
        "w1": _pad2d(w1, in_f, hid_p).astype(BF16),
        "b1": _pad2d(b1.reshape(1, -1), 1, hid_p).astype(F32),
        "w2": _pad2d(w2, hid_p, out_p).astype(BF16),
        "b2": _pad2d(b2.reshape(1, -1), 1, out_p).astype(F32),
    }


# ----------------------------------------------------------------------------
# Wrapper: tile the batch and call the fused kernel.
# ----------------------------------------------------------------------------
def bottleneck_forward(padded_params, x, out_features):
    """y = ReLU(x @ W1 + b1) @ W2 + b2, fused in a single pallas_call."""
    w1 = padded_params["w1"]
    b1 = padded_params["b1"]
    w2 = padded_params["w2"]
    b2 = padded_params["b2"]

    batch, in_f = x.shape
    assert w1.shape[0] == in_f
    hid_p = w1.shape[1]
    out_p = w2.shape[1]

    # Batch tiling: one block for small batches (no pipeline prologue/epilogue
    # or per-step overhead); 256-row tiles (matches the 256-wide MXU M dim on
    # v6e/v7x) with an even grid for large batches so both v7x TensorCores
    # get work.
    batch_8 = _round_up(batch, SUBLANE)
    tb = batch_8 if batch_8 <= 512 else 256
    batch_p = _round_up(batch_8, tb)
    grid_len = batch_p // tb
    if grid_len > 1 and grid_len % 2 == 1:
        batch_p = _round_up(batch_8, 2 * tb)   # keep the grid even for v7x
        grid_len = batch_p // tb

    # Only the batch dim of x ever needs padding; the feature axis stays at
    # the true in_f (block dim == full array dim), so no 4x x-read inflation.
    x_p = x if batch_p == batch else jnp.pad(x, ((0, batch_p - batch), (0, 0)))

    flops = 2 * batch_p * (in_f * hid_p + hid_p * out_p)
    bytes_accessed = (
        batch_p * in_f * 4                       # x read (f32)
        + (w1.size + w2.size) * 2                # weights (bf16)
        + (b1.size + b2.size) * 4                # biases (f32)
        + batch_p * out_p * 4)                   # output write (f32)

    compiler_params = pltpu.CompilerParams(
        dimension_semantics=("parallel",) if grid_len > 1 else ("arbitrary",),
        vmem_limit_bytes=VMEM_LIMIT_BYTES,
    )

    y_p = pl.pallas_call(
        _bottleneck_kernel,
        out_shape=jax.ShapeDtypeStruct((batch_p, out_p), F32),
        grid_spec=pltpu.PrefetchScalarGridSpec(
            num_scalar_prefetch=0,
            grid=(grid_len,),
            in_specs=[
                # x: tiled along batch, true feature width.
                pl.BlockSpec((tb, in_f), lambda i: (i, 0)),
                # Weights / biases: constant index_map -> VMEM-resident.
                pl.BlockSpec((in_f, hid_p), lambda i: (0, 0)),
                pl.BlockSpec((1, hid_p), lambda i: (0, 0)),
                pl.BlockSpec((hid_p, out_p), lambda i: (0, 0)),
                pl.BlockSpec((1, out_p), lambda i: (0, 0)),
            ],
            out_specs=pl.BlockSpec((tb, out_p), lambda i: (i, 0)),
        ),
        compiler_params=compiler_params,
        cost_estimate=pl.CostEstimate(
            flops=flops, transcendentals=0, bytes_accessed=bytes_accessed),
    )(x_p, w1, b1, w2, b2)

    if batch_p != batch or out_p != out_features:
        y_p = y_p[:batch, :out_features]
    return y_p


# ----------------------------------------------------------------------------
# Parameter construction (deterministic, in-script) and pure-JAX reference.
# ----------------------------------------------------------------------------
def init_bottleneck_params(key, in_features, out_features):
    hidden_features = in_features * 2
    k1, k2, k3, k4 = jax.random.split(key, 4)
    return {
        "w1": jax.random.normal(k1, (in_features, hidden_features), F32) * 0.05,
        "b1": jax.random.normal(k2, (hidden_features,), F32) * 0.05,
        "w2": jax.random.normal(k3, (hidden_features, out_features), F32) * 0.05,
        "b2": jax.random.normal(k4, (out_features,), F32) * 0.05,
    }


def bottleneck_reference(params, x):
    """Pure-JAX f32 reference for the same forward (correctness check)."""
    h = jnp.maximum(x @ params["w1"] + params["b1"], 0.0)
    return h @ params["w2"] + params["b2"]


# ----------------------------------------------------------------------------
if __name__ == "__main__":
    IN_FEATURES = 32
    OUT_FEATURES = 16
    BATCH = 256

    root = jax.random.PRNGKey(0)
    k_params, k_x = jax.random.split(root)

    params = init_bottleneck_params(k_params, IN_FEATURES, OUT_FEATURES)
    # One-time preparation: padding + bf16 cast happen OUTSIDE the hot path.
    padded_params = prepare_bottleneck_params(params)

    x = jax.random.normal(k_x, (BATCH, IN_FEATURES), F32)

    out = bottleneck_forward(padded_params, x, OUT_FEATURES)
    out = jax.block_until_ready(out)

    assert out.shape == (BATCH, OUT_FEATURES), out.shape
    assert bool(jnp.all(jnp.isfinite(out)))

    ref = jax.block_until_ready(bottleneck_reference(params, x))
    # Tolerance loosened vs. the all-f32 version because MXU operands are bf16
    # (f32 accumulation).
    assert jnp.allclose(out, ref, rtol=2e-2, atol=2e-2), float(
        jnp.max(jnp.abs(out - ref)))

    print("KERNEL_OK")
</pallas_src>

<mosaic_0001>
module attributes {stable_mosaic.version = 11 : i64} {
  func.func @_bottleneck_kernel(%arg0: i32, %arg1: memref<256x32xf32, #tpu.memory_space<vmem>>, %arg2: memref<32x128xbf16, #tpu.memory_space<vmem>>, %arg3: memref<1x128xf32, #tpu.memory_space<vmem>>, %arg4: memref<128x128xbf16, #tpu.memory_space<vmem>>, %arg5: memref<1x128xf32, #tpu.memory_space<vmem>>, %arg6: memref<256x128xf32, #tpu.memory_space<vmem>>) attributes {dimension_semantics = [#tpu.dimension_semantics<arbitrary>], iteration_bounds = array<i64: 1>, scalar_prefetch = 0 : i64, scratch_operands = 0 : i64, tpu.core_type = #tpu.core_type<tc>, window_params = [{transform_indices = @transform_0, window_bounds = array<i64: 256, 32>}, {pipeline_mode = #tpu.pipeline_mode<synchronous>, transform_indices = @transform_1, window_bounds = array<i64: 32, 128>}, {pipeline_mode = #tpu.pipeline_mode<synchronous>, transform_indices = @transform_2, window_bounds = array<i64: 1, 128>}, {pipeline_mode = #tpu.pipeline_mode<synchronous>, transform_indices = @transform_3, window_bounds = array<i64: 128, 128>}, {pipeline_mode = #tpu.pipeline_mode<synchronous>, transform_indices = @transform_4, window_bounds = array<i64: 1, 128>}, {transform_indices = @transform_5, window_bounds = array<i64: 256, 128>}]} {
    %c0 = arith.constant 0 : index
    %c0_0 = arith.constant 0 : index
    %0 = vector.load %arg3[%c0, %c0_0] : memref<1x128xf32, #tpu.memory_space<vmem>>, vector<1x128xf32>
    %c0_1 = arith.constant 0 : index
    %c0_2 = arith.constant 0 : index
    %1 = vector.load %arg5[%c0_1, %c0_2] : memref<1x128xf32, #tpu.memory_space<vmem>>, vector<1x128xf32>
    %c0_3 = arith.constant 0 : index
    %c0_4 = arith.constant 0 : index
    %2 = vector.load %arg1[%c0_3, %c0_4] : memref<256x32xf32, #tpu.memory_space<vmem>>, vector<256x32xf32>
    %3 = arith.truncf %2 : vector<256x32xf32> to vector<256x32xbf16>
    %c0_5 = arith.constant 0 : index
    %c0_6 = arith.constant 0 : index
    %4 = vector.load %arg2[%c0_5, %c0_6] : memref<32x128xbf16, #tpu.memory_space<vmem>>, vector<32x128xbf16>
    %cst = arith.constant dense<0.000000e+00> : vector<256x128xf32>
    %5 = tpu.matmul %3, %4, %cst {dimension_numbers = #tpu.dot_dimension_numbers<[1], [0], [0], [1], [0, 0, 1, 1], [], []>} : vector<256x32xbf16>, vector<32x128xbf16>, vector<256x128xf32> -> vector<256x128xf32>
    %6 = vector.broadcast %0 : vector<1x128xf32> to vector<256x128xf32>
    %7 = arith.addf %5, %6 : vector<256x128xf32>
    %cst_7 = arith.constant 0.000000e+00 : f32
    %8 = vector.broadcast %cst_7 : f32 to vector<256x128xf32>
    %9 = arith.maximumf %7, %8 : vector<256x128xf32>
    %10 = arith.truncf %9 : vector<256x128xf32> to vector<256x128xbf16>
    %c0_8 = arith.constant 0 : index
    %c0_9 = arith.constant 0 : index
    %11 = vector.load %arg4[%c0_8, %c0_9] : memref<128x128xbf16, #tpu.memory_space<vmem>>, vector<128x128xbf16>
    %cst_10 = arith.constant dense<0.000000e+00> : vector<256x128xf32>
    %12 = tpu.matmul %10, %11, %cst_10 {dimension_numbers = #tpu.dot_dimension_numbers<[1], [0], [0], [1], [0, 0, 1, 1], [], []>} : vector<256x128xbf16>, vector<128x128xbf16>, vector<256x128xf32> -> vector<256x128xf32>
    %13 = vector.broadcast %1 : vector<1x128xf32> to vector<256x128xf32>
    %14 = arith.addf %12, %13 : vector<256x128xf32>
    %c0_11 = arith.constant 0 : index
    %c0_12 = arith.constant 0 : index
    %15 = vector.load %arg6[%c0_11, %c0_12] : memref<256x128xf32, #tpu.memory_space<vmem>>, vector<256x128xf32>
    tpu.vector_store %arg6[%c0_11, %c0_12], %14 {strides = array<i32>} : memref<256x128xf32, #tpu.memory_space<vmem>>, vector<256x128xf32>,
    return
  }
  func.func @transform_0(%arg0: i32) -> (i32, i32) {
    %c0_i32 = arith.constant 0 : i32
    %c0_i32_0 = arith.constant 0 : i32
    return %arg0, %c0_i32 : i32, i32
  }
  func.func @transform_1(%arg0: i32) -> (i32, i32) {
    %c0_i32 = arith.constant 0 : i32
    %c0_i32_0 = arith.constant 0 : i32
    %c0_i32_1 = arith.constant 0 : i32
    return %c0_i32, %c0_i32_0 : i32, i32
  }
  func.func @transform_2(%arg0: i32) -> (i32, i32) {
    %c0_i32 = arith.constant 0 : i32
    %c0_i32_0 = arith.constant 0 : i32
    %c0_i32_1 = arith.constant 0 : i32
    return %c0_i32, %c0_i32_0 : i32, i32
  }
  func.func @transform_3(%arg0: i32) -> (i32, i32) {
    %c0_i32 = arith.constant 0 : i32
    %c0_i32_0 = arith.constant 0 : i32
    %c0_i32_1 = arith.constant 0 : i32
    return %c0_i32, %c0_i32_0 : i32, i32
  }
  func.func @transform_4(%arg0: i32) -> (i32, i32) {
    %c0_i32 = arith.constant 0 : i32
    %c0_i32_0 = arith.constant 0 : i32
    %c0_i32_1 = arith.constant 0 : i32
    return %c0_i32, %c0_i32_0 : i32, i32
  }
  func.func @transform_5(%arg0: i32) -> (i32, i32) {
    %c0_i32 = arith.constant 0 : i32
    %c0_i32_0 = arith.constant 0 : i32
    return %arg0, %c0_i32 : i32, i32
  }
}

</mosaic_0001>

<bundles_post_ra>
// kernel: tpu_custom_call.1
= control target key start
LH: loop header
LB: loop body
LE: loop exit
PB: predicated region body
PF: predicated region fallthrough
CT: control target
= control target key end

     0   :  { %s842_s0 = inlined_call_operand.vmem [shape: f32[256,32], index: 0, kind: input, shape index: {}]   ;;  %s843_s1 = inlined_call_operand.vmem [shape: bf16[32,128], index: 1, kind: input, shape index: {}]   ;;  %s844_s2 = inlined_call_operand.vmem [shape: f32[1,128], index: 2, kind: input, shape index: {}]   ;;  %s845_s3 = inlined_call_operand.vmem [shape: bf16[128,128], index: 3, kind: input, shape index: {}]   ;;  %s846_s4 = inlined_call_operand.vmem [shape: f32[1,128], index: 4, kind: input, shape index: {}]   ;;  %s847_s5 = inlined_call_operand.hbm [shape: f32[256,128], index: 5, kind: output, shape index: {}]  }
   0x1   :  { %v540_v0 = vld [vmem:[%s843_s1 + $0x8] sm:$0xff]  ;;  %v539_v1 = vld [vmem:[%s843_s1] sm:$0xff] }
   0x2   :  { %146 = vmatpush.bf16.msra.mxu0 %v540_v0  ;;  %v24_v2 = vld [vmem:[%s842_s0] sm:$0xff]  ;;  %v25_v3 = vld [vmem:[%s842_s0 + $0x8] sm:$0xff]  ;;  %549 = vmatpush.bf16.msra.mxu3 %v540_v0 }
   0x3   :  { %10 = vsyncpa [#allocation3], 0  ;;  %v56_v4 = vpack.c.bf16 %v25_v3, %v24_v2  ;;  %vm91_vm0 = vcmask 261120   ;;  %v26_v5 = vld [vmem:[%s842_s0 + $0x10] sm:$0xff]  ;;  %v27_v6 = vld [vmem:[%s842_s0 + $0x18] sm:$0xff]  ;;  %s471_s27 = sshll.u32 %s847_s5, 4  ;;  %s472_s27 = int_to_ptr.hbm [resolvable:$true] %s471_s27 }
   0x4   :  { %v57_v7 = vpack.c.bf16 %v27_v6, %v26_v5  ;;  %v28_v8 = vld [vmem:[%s842_s0 + $0x20] sm:$0xff]  ;;  %v29_v9 = vld [vmem:[%s842_s0 + $0x28] sm:$0xff]  ;;  %v30_v11 = vld [vmem:[%s842_s0 + $0x30] sm:$0xff]  ;;  %s591_s1 = smov 128   ;;  %s592_s28 = smov 8  }
   0x5   :  { %v58_v10 = vpack.c.bf16 %v29_v9, %v28_v8  ;;  %v31_v12 = vld [vmem:[%s842_s0 + $0x38] sm:$0xff]  ;;  %v32_v14 = vld [vmem:[%s842_s0 + $0x40] sm:$0xff]  ;;  %v33_v15 = vld [vmem:[%s842_s0 + $0x48] sm:$0xff] }
   0x6   :  { %147 = vmatpush.bf16.msra.mxu0 %v539_v1  ;;  %550 = vmatpush.bf16.msra.mxu3 %v539_v1  ;;  %v59_v13 = vpack.c.bf16 %v31_v12, %v30_v11  ;;  %v60_v16 = vpack.c.bf16 %v33_v15, %v32_v14  ;;  %v548_v17 = vld [vmem:[%s845_s3 + $0x38] sm:$0xff]  ;;  %v34_v18 = vld [vmem:[%s842_s0 + $0x50] sm:$0xff]  ;;  %v546_v22 = vld [vmem:[%s845_s3 + $0x28] sm:$0xff] }
   0x7   :  { %344 = vmatpush.bf16.msra.mxu1 %v548_v17  ;;  %551 = vmatpush.bf16.msra.mxu2 %v548_v17  ;;  %v35_v19 = vld [vmem:[%s842_s0 + $0x58] sm:$0xff]  ;;  %v547_v21 = vld [vmem:[%s845_s3 + $0x30] sm:$0xff]  ;;  %v545_v23 = vld [vmem:[%s845_s3 + $0x20] sm:$0xff] }
   0x8   :  { %v61_v20 = vpack.c.bf16 %v35_v19, %v34_v18  ;;  %v36_v24 = vld [vmem:[%s842_s0 + $0x60] sm:$0xff]  ;;  %v37_v25 = vld [vmem:[%s842_s0 + $0x68] sm:$0xff]  ;;  %v544_v26 = vld [vmem:[%s845_s3 + $0x18] sm:$0xff] }
   0x9   :  { %491 = vmatmul.msk.bf16.vlgmr.msra.gmra.mxu0 %vm91_vm0, %v56_v4  ;;  %v62_v27 = vpack.c.bf16 %v37_v25, %v36_v24  ;;  %v543_v28 = vld [vmem:[%s845_s3 + $0x10] sm:$0xff]  ;;  %v43_v30 = vld [vmem:[%s842_s0 + $0x98] sm:$0xff]  ;;  %v542_v32 = vld [vmem:[%s845_s3 + $0x8] sm:$0xff] }
   0xa   :  { %v42_v29 = vld [vmem:[%s842_s0 + $0x90] sm:$0xff]  ;;  %v541_v33 = vld [vmem:[%s845_s3] sm:$0xff]  ;;  %v39_v35 = vld [vmem:[%s842_s0 + $0x78] sm:$0xff] }
   0xb   :  { %345 = vmatpush.bf16.msra.mxu1 %v547_v21  ;;  %552 = vmatpush.bf16.msra.mxu2 %v547_v21  ;;  %v65_v31 = vpack.c.bf16 %v43_v30, %v42_v29  ;;  %v38_v34 = vld [vmem:[%s842_s0 + $0x70] sm:$0xff]  ;;  %v44_v37 = vld [vmem:[%s842_s0 + $0xa0] sm:$0xff]  ;;  %v45_v38 = vld [vmem:[%s842_s0 + $0xa8] sm:$0xff] }
   0xc   :  { %v63_v36 = vpack.c.bf16 %v39_v35, %v38_v34  ;;  %v66_v39 = vpack.c.bf16 %v45_v38, %v44_v37  ;;  %v40_v40 = vld [vmem:[%s842_s0 + $0x80] sm:$0xff]  ;;  %v41_v41 = vld [vmem:[%s842_s0 + $0x88] sm:$0xff]  ;;  %v46_v44 = vld [vmem:[%s842_s0 + $0xb0] sm:$0xff] }
   0xd   :  { %500 = vmatmul.msk.bf16.vlgmr.msra.gmra.mxu3 %vm91_vm0, %v65_v31  ;;  %v64_v42 = vpack.c.bf16 %v41_v41, %v40_v40  ;;  %v47_v45 = vld [vmem:[%s842_s0 + $0xb8] sm:$0xff]  ;;  %v738_v46 = vld [vmem:[%s844_s2] ss:$0 sm:$0xff]  ;;  %v49_v56 = vld [vmem:[%s842_s0 + $0xc8] sm:$0xff] }
   0xe   :  { %v67_v47 = vpack.c.bf16 %v47_v45, %v46_v44  ;;  %v48_v55 = vld [vmem:[%s842_s0 + $0xc0] sm:$0xff]  ;;  %v50_v1 = vld [vmem:[%s842_s0 + $0xd0] sm:$0xff]  ;;  %v51_v2 = vld [vmem:[%s842_s0 + $0xd8] sm:$0xff] }
   0xf   :  { %346 = vmatpush.bf16.msra.mxu1 %v546_v22  ;;  %553 = vmatpush.bf16.msra.mxu2 %v546_v22  ;;  %v68_v57 = vpack.c.bf16 %v49_v56, %v48_v55  ;;  %v69_v3 = vpack.c.bf16 %v51_v2, %v50_v1  ;;  %v52_v11 = vld [vmem:[%s842_s0 + $0xe0] sm:$0xff]  ;;  %v53_v12 = vld [vmem:[%s842_s0 + $0xe8] sm:$0xff]  ;;  %v54_v21 = vld [vmem:[%s842_s0 + $0xf0] sm:$0xff] }
  0x10   :  { %v55_v22 = vld [vmem:[%s842_s0 + $0xf8] sm:$0xff] }
  0x13   :  { %347 = vmatpush.bf16.msra.mxu1 %v545_v23  ;;  %554 = vmatpush.bf16.msra.mxu2 %v545_v23  ;;  %v71_v23 = vpack.c.bf16 %v55_v22, %v54_v21 }
  0x17   :  { %348 = vmatpush.bf16.msra.mxu1 %v544_v26  ;;  %555 = vmatpush.bf16.msra.mxu2 %v544_v26 }
  0x19   :  { %492 = vmatmul.msk.bf16.gmra.mxu0 %vm91_vm0, %v57_v7 }
  0x1b   :  { %349 = vmatpush.bf16.msra.mxu1 %v543_v28  ;;  %556 = vmatpush.bf16.msra.mxu2 %v543_v28 }
  0x1d   :  { %501 = vmatmul.msk.bf16.gmra.mxu3 %vm91_vm0, %v66_v39 }
  0x1f   :  { %350 = vmatpush.bf16.msra.mxu1 %v542_v32  ;;  %557 = vmatpush.bf16.msra.mxu2 %v542_v32 }
  0x23   :  { %351 = vmatpush.bf16.msra.mxu1 %v541_v33  ;;  %558 = vmatpush.bf16.msra.mxu2 %v541_v33 }
  0x29   :  { %493 = vmatmul.msk.bf16.gmra.mxu0 %vm91_vm0, %v58_v10 }
  0x2d   :  { %502 = vmatmul.msk.bf16.gmra.mxu3 %vm91_vm0, %v67_v47 }
  0x39   :  { %494 = vmatmul.msk.bf16.gmra.mxu0 %vm91_vm0, %v59_v13  ;;  %v70_v13 = vpack.c.bf16 %v53_v12, %v52_v11 }
  0x3d   :  { %503 = vmatmul.msk.bf16.gmra.mxu3 %vm91_vm0, %v68_v57 }
  0x49   :  { %495 = vmatmul.msk.bf16.gmra.mxu0 %vm91_vm0, %v60_v16 }
  0x4d   :  { %504 = vmatmul.msk.bf16.gmra.mxu3 %vm91_vm0, %v69_v3 }
  0x59   :  { %496 = vmatmul.msk.bf16.gmra.mxu0 %vm91_vm0, %v61_v20 }
  0x5d   :  { %505 = vmatmul.msk.bf16.gmra.mxu3 %vm91_vm0, %v70_v13 }
  0x69   :  { %497 = vmatmul.msk.bf16.gmra.mxu0 %vm91_vm0, %v62_v27 }
  0x6d   :  { %506 = vmatmul.msk.bf16.gmra.mxu3 %vm91_vm0, %v71_v23 }
  0x79   :  { %498 = vmatmul.msk.bf16.gmra.mxu0 %vm91_vm0, %v63_v36 }
  0x86   :  { %v149_v43 = vpop.f32.mrf.mxu0 }
  0x87   :  { %v150_v48 = vadd.f32 %v738_v46, %v149_v43 }
  0x89   :  { %499 = vmatmul.msk.bf16.gmra.mxu0 %vm91_vm0, %v64_v42  ;;  %v229_v51 = vmax.f32 %v150_v48, 0.0 }
  0x8e   :  { %v151_v49 = vpop.f32.mrf.mxu0 }
  0x8f   :  { %v152_v50 = vadd.f32 %v738_v46, %v151_v49 }
  0x90   :  { %v194_v45 = vpop.f32.mrf.mxu3 }
  0x91   :  { %v230_v52 = vmax.f32 %v152_v50, 0.0  ;;  %v195_v3 = vadd.f32 %v738_v46, %v194_v45 }
  0x93   :  { %v261_v53 = vpack.c.bf16 %v230_v52, %v229_v51 }
  0x95   :  { %352 = vmatmul.bf16.vlgmr.msra.gmra.mxu1 %v261_v53 }
  0x96   :  { %v154_v54 = vpop.f32.mrf.mxu0 }
  0x97   :  { %v155_v58 = vadd.f32 %v738_v46, %v154_v54 }
  0x98   :  { %v196_v50 = vpop.f32.mrf.mxu3 }
  0x99   :  { %v231_v61 = vmax.f32 %v155_v58, 0.0 }
  0x9e   :  { %v156_v59 = vpop.f32.mrf.mxu0 }
  0x9f   :  { %v157_v60 = vadd.f32 %v738_v46, %v156_v59  ;;  %v791_v59 = vld [vmem:[%s846_s4] ss:$0 sm:$0xff]  ;;  %s590_s4 = smov [#allocation2]  }
  0xa0   :  { %v199_v55 = vpop.f32.mrf.mxu3  ;;  %s469_s25 = sshll.u32 %s590_s4, 4  ;;  %s470_s25 = int_to_ptr.vmem [resolvable:$true] %s469_s25 }
  0xa1   :  { %v232_v62 = vmax.f32 %v157_v60, 0.0 }
  0xa3   :  { %v262_v63 = vpack.c.bf16 %v232_v62, %v231_v61 }
  0xa5   :  { %357 = vmatmul.bf16.gmra.mxu1 %v262_v63 }
  0xa6   :  { %v159_v0 = vpop.f32.mrf.mxu0 }
  0xa7   :  { %v160_v4 = vadd.f32 %v738_v46, %v159_v0 }
  0xa8   :  { %v201_v1 = vpop.f32.mrf.mxu3 }
  0xa9   :  { %v233_v7 = vmax.f32 %v160_v4, 0.0  ;;  %v197_v4 = vadd.f32 %v738_v46, %v196_v50 }
  0xae   :  { %v161_v5 = vpop.f32.mrf.mxu0 }
  0xaf   :  { %v162_v6 = vadd.f32 %v738_v46, %v161_v5 }
  0xb1   :  { %v234_v8 = vmax.f32 %v162_v6, 0.0  ;;  %v204_v6 = vpop.f32.mrf.mxu3 }
  0xb3   :  { %v263_v9 = vpack.c.bf16 %v234_v8, %v233_v7  ;;  %v247_v7 = vmax.f32 %v195_v3, 0.0  ;;  %v248_v8 = vmax.f32 %v197_v4, 0.0 }
  0xb5   :  { %362 = vmatmul.bf16.gmra.mxu1 %v263_v9  ;;  %v270_v11 = vpack.c.bf16 %v248_v8, %v247_v7 }
  0xb6   :  { %v164_v10 = vpop.f32.mrf.mxu0 }
  0xb7   :  { %v165_v14 = vadd.f32 %v738_v46, %v164_v10 }
  0xb9   :  { %v235_v17 = vmax.f32 %v165_v14, 0.0  ;;  %v206_v12 = vpop.f32.mrf.mxu3  ;;  %v200_v14 = vadd.f32 %v738_v46, %v199_v55 }
  0xbe   :  { %v166_v15 = vpop.f32.mrf.mxu0 }
  0xbf   :  { %v167_v16 = vadd.f32 %v738_v46, %v166_v15  ;;  %v202_v15 = vadd.f32 %v738_v46, %v201_v1 }
  0xc1   :  { %v236_v18 = vmax.f32 %v167_v16, 0.0 }
  0xc3   :  { %v264_v19 = vpack.c.bf16 %v236_v18, %v235_v17  ;;  %v249_v17 = vmax.f32 %v200_v14, 0.0  ;;  %v250_v18 = vmax.f32 %v202_v15, 0.0 }
  0xc5   :  { %367 = vmatmul.bf16.gmra.mxu1 %v264_v19  ;;  %v271_v22 = vpack.c.bf16 %v250_v18, %v249_v17 }
  0xc6   :  { %v169_v20 = vpop.f32.mrf.mxu0 }
  0xc7   :  { %v170_v24 = vadd.f32 %v738_v46, %v169_v20  ;;  %v209_v20 = vpop.f32.mrf.mxu3 }
  0xc9   :  { %v237_v27 = vmax.f32 %v170_v24, 0.0  ;;  %v205_v24 = vadd.f32 %v738_v46, %v204_v6 }
  0xce   :  { %v171_v25 = vpop.f32.mrf.mxu0 }
  0xcf   :  { %v172_v26 = vadd.f32 %v738_v46, %v171_v25  ;;  %v207_v25 = vadd.f32 %v738_v46, %v206_v12 }
  0xd1   :  { %v238_v28 = vmax.f32 %v172_v26, 0.0 }
  0xd3   :  { %v265_v29 = vpack.c.bf16 %v238_v28, %v237_v27  ;;  %v211_v27 = vpop.f32.mrf.mxu3  ;;  %v251_v28 = vmax.f32 %v205_v24, 0.0 }
  0xd5   :  { %372 = vmatmul.bf16.gmra.mxu1 %v265_v29  ;;  %v252_v29 = vmax.f32 %v207_v25, 0.0 }
  0xd6   :  { %v174_v30 = vpop.f32.mrf.mxu0 }
  0xd7   :  { %v175_v31 = vadd.f32 %v738_v46, %v174_v30 }
  0xd9   :  { %v239_v34 = vmax.f32 %v175_v31, 0.0 }
  0xde   :  { %v176_v32 = vpop.f32.mrf.mxu0 }
  0xdf   :  { %v177_v33 = vadd.f32 %v738_v46, %v176_v32  ;;  %v272_v32 = vpack.c.bf16 %v252_v29, %v251_v28 }
  0xe1   :  { %v240_v35 = vmax.f32 %v177_v33, 0.0  ;;  %v214_v33 = vpop.f32.mrf.mxu3 }
  0xe3   :  { %v266_v36 = vpack.c.bf16 %v240_v35, %v239_v34  ;;  %v210_v35 = vadd.f32 %v738_v46, %v209_v20 }
  0xe5   :  { %377 = vmatmul.bf16.gmra.mxu1 %v266_v36  ;;  %v212_v36 = vadd.f32 %v738_v46, %v211_v27 }
  0xe6   :  { %v179_v37 = vpop.f32.mrf.mxu0 }
  0xe7   :  { %v180_v38 = vadd.f32 %v738_v46, %v179_v37 }
  0xe9   :  { %v241_v41 = vmax.f32 %v180_v38, 0.0  ;;  %v253_v38 = vmax.f32 %v210_v35, 0.0 }
  0xee   :  { %v181_v39 = vpop.f32.mrf.mxu0 }
  0xef   :  { %v182_v40 = vadd.f32 %v738_v46, %v181_v39  ;;  %v254_v39 = vmax.f32 %v212_v36, 0.0 }
  0xf1   :  { %v242_v42 = vmax.f32 %v182_v40, 0.0  ;;  %v216_v40 = vpop.f32.mrf.mxu3 }
  0xf3   :  { %v267_v43 = vpack.c.bf16 %v242_v42, %v241_v41 }
  0xf5   :  { %382 = vmatmul.bf16.gmra.mxu1 %v267_v43  ;;  %v273_v43 = vpack.c.bf16 %v254_v39, %v253_v38 }
  0xf6   :  { %v184_v44 = vpop.f32.mrf.mxu0 }
  0xf7   :  { %v185_v47 = vadd.f32 %v738_v46, %v184_v44 }
  0xf9   :  { %v243_v51 = vmax.f32 %v185_v47, 0.0  ;;  %v219_v45 = vpop.f32.mrf.mxu3  ;;  %v215_v47 = vadd.f32 %v738_v46, %v214_v33 }
  0xfb   :  { %v255_v50 = vmax.f32 %v215_v47, 0.0 }
  0xfe   :  { %v186_v48 = vpop.f32.mrf.mxu0 }
  0xff   :  { %v187_v49 = vadd.f32 %v738_v46, %v186_v48  ;;  %v217_v48 = vadd.f32 %v738_v46, %v216_v40 }
 0x101   :  { %v244_v52 = vmax.f32 %v187_v49, 0.0  ;;  %v221_v55 = vpop.f32.mrf.mxu3 }
 0x103   :  { %v268_v53 = vpack.c.bf16 %v244_v52, %v243_v51  ;;  %v256_v51 = vmax.f32 %v217_v48, 0.0 }
 0x105   :  { %387 = vmatmul.bf16.gmra.mxu1 %v268_v53 }
 0x106   :  { %v189_v54 = vpop.f32.mrf.mxu0 }
 0x107   :  { %v190_v56 = vadd.f32 %v738_v46, %v189_v54  ;;  %v274_v54 = vpack.c.bf16 %v256_v51, %v255_v50 }
 0x109   :  { %v245_v60 = vmax.f32 %v190_v56, 0.0 }
 0x10e   :  { %v191_v57 = vpop.f32.mrf.mxu0 }
 0x10f   :  { %v192_v58 = vadd.f32 %v738_v46, %v191_v57  ;;  %v220_v57 = vadd.f32 %v738_v46, %v219_v45 }
 0x111   :  { %v246_v61 = vmax.f32 %v192_v58, 0.0  ;;  %v222_v58 = vadd.f32 %v738_v46, %v221_v55 }
 0x112   :  { %v353_v62 = vpop.f32.mrf.mxu1 }
 0x113   :  { %v354_v63 = vadd.f32 %v791_v59, %v353_v62  ;;  %v269_v0 = vpack.c.bf16 %v246_v61, %v245_v60  ;;  %v224_v61 = vpop.f32.mrf.mxu3  ;;  %v257_v62 = vmax.f32 %v220_v57, 0.0 }
 0x115   :  { %433 = vst [vmem:[#allocation2] sm:$0xff] %v354_v63  ;;  %392 = vmatmul.bf16.vlgmr.msra.gmra.mxu2 %v269_v0  ;;  %v258_v63 = vmax.f32 %v222_v58, 0.0 }
 0x11a   :  { %v355_v2 = vpop.f32.mrf.mxu1 }
 0x11b   :  { %v356_v5 = vadd.f32 %v791_v59, %v355_v2  ;;  %v275_v2 = vpack.c.bf16 %v258_v63, %v257_v62  ;;  %v226_v3 = vpop.f32.mrf.mxu3 }
 0x11c   :  { %v227_v6 = vadd.f32 %v738_v46, %v226_v3 }
 0x11d   :  { %434 = vst [vmem:[#allocation2 + $0x8] sm:$0xff] %v356_v5  ;;  %v225_v5 = vadd.f32 %v738_v46, %v224_v61 }
 0x11f   :  { %v259_v8 = vmax.f32 %v225_v5, 0.0 }
 0x122   :  { %v358_v9 = vpop.f32.mrf.mxu1 }
 0x123   :  { %v359_v10 = vadd.f32 %v791_v59, %v358_v9  ;;  %v260_v9 = vmax.f32 %v227_v6, 0.0 }
 0x125   :  { %435 = vst [vmem:[#allocation2 + $0x10] sm:$0xff] %v359_v10  ;;  %397 = vmatmul.bf16.gmra.mxu2 %v270_v11  ;;  %v276_v12 = vpack.c.bf16 %v260_v9, %v259_v8 }
 0x12a   :  { %v360_v13 = vpop.f32.mrf.mxu1 }
 0x12b   :  { %v361_v16 = vadd.f32 %v791_v59, %v360_v13 }
 0x12d   :  { %436 = vst [vmem:[#allocation2 + $0x18] sm:$0xff] %v361_v16 }
 0x132   :  { %v363_v19 = vpop.f32.mrf.mxu1 }
 0x133   :  { %v364_v21 = vadd.f32 %v791_v59, %v363_v19 }
 0x135   :  { %437 = vst [vmem:[#allocation2 + $0x20] sm:$0xff] %v364_v21  ;;  %402 = vmatmul.bf16.gmra.mxu2 %v271_v22 }
 0x13a   :  { %v365_v23 = vpop.f32.mrf.mxu1 }
 0x13b   :  { %v366_v26 = vadd.f32 %v791_v59, %v365_v23 }
 0x13d   :  { %438 = vst [vmem:[#allocation2 + $0x28] sm:$0xff] %v366_v26 }
 0x142   :  { %v368_v30 = vpop.f32.mrf.mxu1 }
 0x143   :  { %v369_v31 = vadd.f32 %v791_v59, %v368_v30 }
 0x145   :  { %439 = vst [vmem:[#allocation2 + $0x30] sm:$0xff] %v369_v31  ;;  %407 = vmatmul.bf16.gmra.mxu2 %v272_v32 }
 0x14a   :  { %v370_v34 = vpop.f32.mrf.mxu1 }
 0x14b   :  { %v371_v37 = vadd.f32 %v791_v59, %v370_v34 }
 0x14d   :  { %440 = vst [vmem:[#allocation2 + $0x38] sm:$0xff] %v371_v37 }
 0x152   :  { %v373_v41 = vpop.f32.mrf.mxu1 }
 0x153   :  { %v374_v42 = vadd.f32 %v791_v59, %v373_v41 }
 0x155   :  { %441 = vst [vmem:[#allocation2 + $0x40] sm:$0xff] %v374_v42  ;;  %412 = vmatmul.bf16.gmra.mxu2 %v273_v43 }
 0x15a   :  { %v375_v44 = vpop.f32.mrf.mxu1 }
 0x15b   :  { %v376_v49 = vadd.f32 %v791_v59, %v375_v44 }
 0x15d   :  { %442 = vst [vmem:[#allocation2 + $0x48] sm:$0xff] %v376_v49 }
 0x162   :  { %v378_v52 = vpop.f32.mrf.mxu1 }
 0x163   :  { %v379_v53 = vadd.f32 %v791_v59, %v378_v52 }
 0x165   :  { %443 = vst [vmem:[#allocation2 + $0x50] sm:$0xff] %v379_v53  ;;  %417 = vmatmul.bf16.gmra.mxu2 %v274_v54 }
 0x16a   :  { %v380_v56 = vpop.f32.mrf.mxu1 }
 0x16b   :  { %v381_v60 = vadd.f32 %v791_v59, %v380_v56 }
 0x16d   :  { %444 = vst [vmem:[#allocation2 + $0x58] sm:$0xff] %v381_v60 }
 0x172   :  { %v383_v0 = vpop.f32.mrf.mxu1 }
 0x173   :  { %v384_v1 = vadd.f32 %v791_v59, %v383_v0 }
 0x175   :  { %445 = vst [vmem:[#allocation2 + $0x60] sm:$0xff] %v384_v1  ;;  %422 = vmatmul.bf16.gmra.mxu2 %v275_v2 }
 0x17a   :  { %v385_v4 = vpop.f32.mrf.mxu1 }
 0x17b   :  { %v386_v7 = vadd.f32 %v791_v59, %v385_v4 }
 0x17d   :  { %446 = vst [vmem:[#allocation2 + $0x68] sm:$0xff] %v386_v7 }
 0x182   :  { %v388_v10 = vpop.f32.mrf.mxu1 }
 0x183   :  { %v389_v11 = vadd.f32 %v791_v59, %v388_v10 }
 0x185   :  { %447 = vst [vmem:[#allocation2 + $0x70] sm:$0xff] %v389_v11  ;;  %427 = vmatmul.bf16.gmra.mxu2 %v276_v12 }
 0x18a   :  { %v390_v13 = vpop.f32.mrf.mxu1 }
 0x18b   :  { %v391_v14 = vadd.f32 %v791_v59, %v390_v13 }
 0x18d   :  { %448 = vst [vmem:[#allocation2 + $0x78] sm:$0xff] %v391_v14 }
 0x198   :  { %v393_v15 = vpop.f32.mrf.mxu2 }
 0x199   :  { %v394_v16 = vadd.f32 %v791_v59, %v393_v15 }
 0x19b   :  { %449 = vst [vmem:[#allocation2 + $0x80] sm:$0xff] %v394_v16 }
 0x1a0   :  { %v395_v46 = vpop.f32.mrf.mxu2 }
 0x1a1   :  { %v396_v17 = vadd.f32 %v791_v59, %v395_v46 }
 0x1a3   :  { %450 = vst [vmem:[#allocation2 + $0x88] sm:$0xff] %v396_v17 }
 0x1a8   :  { %v398_v18 = vpop.f32.mrf.mxu2 }
 0x1a9   :  { %v399_v19 = vadd.f32 %v791_v59, %v398_v18 }
 0x1ab   :  { %451 = vst [vmem:[#allocation2 + $0x90] sm:$0xff] %v399_v19 }
 0x1b0   :  { %v400_v20 = vpop.f32.mrf.mxu2 }
 0x1b1   :  { %v401_v21 = vadd.f32 %v791_v59, %v400_v20 }
 0x1b3   :  { %452 = vst [vmem:[#allocation2 + $0x98] sm:$0xff] %v401_v21 }
 0x1b8   :  { %v403_v22 = vpop.f32.mrf.mxu2 }
 0x1b9   :  { %v404_v23 = vadd.f32 %v791_v59, %v403_v22 }
 0x1bb   :  { %453 = vst [vmem:[#allocation2 + $0xa0] sm:$0xff] %v404_v23 }
 0x1c0   :  { %v405_v24 = vpop.f32.mrf.mxu2 }
 0x1c1   :  { %v406_v25 = vadd.f32 %v791_v59, %v405_v24 }
 0x1c3   :  { %454 = vst [vmem:[#allocation2 + $0xa8] sm:$0xff] %v406_v25 }
 0x1c8   :  { %v408_v26 = vpop.f32.mrf.mxu2 }
 0x1c9   :  { %v409_v27 = vadd.f32 %v791_v59, %v408_v26 }
 0x1cb   :  { %455 = vst [vmem:[#allocation2 + $0xb0] sm:$0xff] %v409_v27 }
 0x1d0   :  { %v410_v28 = vpop.f32.mrf.mxu2 }
 0x1d1   :  { %v411_v29 = vadd.f32 %v791_v59, %v410_v28 }
 0x1d3   :  { %456 = vst [vmem:[#allocation2 + $0xb8] sm:$0xff] %v411_v29 }
 0x1d8   :  { %v413_v30 = vpop.f32.mrf.mxu2 }
 0x1d9   :  { %v414_v31 = vadd.f32 %v791_v59, %v413_v30 }
 0x1db   :  { %457 = vst [vmem:[#allocation2 + $0xc0] sm:$0xff] %v414_v31 }
 0x1e0   :  { %v415_v32 = vpop.f32.mrf.mxu2 }
 0x1e1   :  { %v416_v33 = vadd.f32 %v791_v59, %v415_v32 }
 0x1e3   :  { %458 = vst [vmem:[#allocation2 + $0xc8] sm:$0xff] %v416_v33 }
 0x1e8   :  { %v418_v34 = vpop.f32.mrf.mxu2 }
 0x1e9   :  { %v419_v35 = vadd.f32 %v791_v59, %v418_v34 }
 0x1eb   :  { %459 = vst [vmem:[#allocation2 + $0xd0] sm:$0xff] %v419_v35 }
 0x1f0   :  { %v420_v36 = vpop.f32.mrf.mxu2 }
 0x1f1   :  { %v421_v37 = vadd.f32 %v791_v59, %v420_v36 }
 0x1f3   :  { %460 = vst [vmem:[#allocation2 + $0xd8] sm:$0xff] %v421_v37 }
 0x1f8   :  { %v423_v38 = vpop.f32.mrf.mxu2 }
 0x1f9   :  { %v424_v39 = vadd.f32 %v791_v59, %v423_v38 }
 0x1fb   :  { %461 = vst [vmem:[#allocation2 + $0xe0] sm:$0xff] %v424_v39 }
 0x200   :  { %v425_v40 = vpop.f32.mrf.mxu2 }
 0x201   :  { %v426_v41 = vadd.f32 %v791_v59, %v425_v40 }
 0x203   :  { %462 = vst [vmem:[#allocation2 + $0xe8] sm:$0xff] %v426_v41 }
 0x208   :  { %v428_v42 = vpop.f32.mrf.mxu2 }
 0x209   :  { %v429_v43 = vadd.f32 %v791_v59, %v428_v42 }
 0x20b   :  { %463 = vst [vmem:[#allocation2 + $0xf0] sm:$0xff] %v429_v43 }
 0x210   :  { %v430_v44 = vpop.f32.mrf.mxu2 }
 0x211   :  { %v431_v45 = vadd.f32 %v791_v59, %v430_v44 }
 0x213   :  { %464 = vst [vmem:[#allocation2 + $0xf8] sm:$0xff] %v431_v45 }
 0x214   :  { %477 = dma.vmem_to_hbm [thread:$0]  %s470_s25, 4096, %s472_s27, [#allocation3], %s591_s1, %s591_s1, %s592_s28  }
 0x215   :  { %588 = dma.done.wait [#allocation3], 4096  }
 0x216   :  { %589 = vsyncadd [#allocation3], 4294963200 }
 0x217   :  { %482 = vsyncpa [#allocation3], 1 }

</bundles_post_ra>
